<compile_context>
chip_gen: v7x
topology: tpu7x:2x2x1
jax: 0.10.0
libtpu: 0.0.40
codegen_flags: <defaults>
</compile_context>

<pallas_src>
import math
import functools

import jax
import jax.numpy as jnp
from jax.experimental import pallas as pl
from jax.experimental.pallas import tpu as pltpu

_LN_EPS = 1e-5  # PyTorch nn.LayerNorm default


def _sigmoid(v):
    return 1.0 / (1.0 + jnp.exp(-v))


def output_layer_kernel(x_ref, w1p_ref, b1p_ref, w1q_ref, b1q_ref,
                        gamma_ref, beta_ref, seg_ref, segt_ref,
                        w2_ref, b2_ref, w3_ref, b3_ref, o_ref,
                        *, inv_cn, eps):
    # x_ref:     (c*t, L)  L = TB*n lanes, TB whole batch samples side by side
    # w1p/w1q:   (c, c*t)  GLU temporal conv halves (align identity folded into w1p)
    # gamma/beta:(c, L)    LayerNorm affine, already tiled per sample
    # seg:       (L, TB)   one-hot lane->sample matrix;  segt = seg.T
    # w2:        (c, c)    tconv2 weight with residual identity folded in
    # w3:        (out_dim, c) 1x1 fc weight
    x = x_ref[...]

    # --- TemporalConvLayer(kt=t, GLU), T collapsed to 1 ---------------------
    p = jnp.dot(w1p_ref[...], x, preferred_element_type=jnp.float32) + b1p_ref[...]
    q = jnp.dot(w1q_ref[...], x, preferred_element_type=jnp.float32) + b1q_ref[...]
    h = p * _sigmoid(q)                                   # (c, L)

    # --- LayerNorm over [n, c] per batch sample (segmented over lanes) ------
    lane_sum = jnp.sum(h, axis=0, keepdims=True)          # (1, L)
    lane_sq = jnp.sum(h * h, axis=0, keepdims=True)       # (1, L)
    samp_sum = jnp.dot(lane_sum, seg_ref[...], preferred_element_type=jnp.float32)  # (1, TB)
    samp_sq = jnp.dot(lane_sq, seg_ref[...], preferred_element_type=jnp.float32)    # (1, TB)
    mean = samp_sum * inv_cn
    var = samp_sq * inv_cn - mean * mean
    mean_l = jnp.dot(mean, segt_ref[...], preferred_element_type=jnp.float32)       # (1, L)
    var_l = jnp.dot(var, segt_ref[...], preferred_element_type=jnp.float32)         # (1, L)
    inv_std = jax.lax.rsqrt(var_l + eps)
    hn = (h - mean_l) * inv_std * gamma_ref[...] + beta_ref[...]                    # (c, L)

    # --- TemporalConvLayer(kt=1, sigmoid): sigmoid(W2@hn + b2 + hn) ----------
    z = _sigmoid(jnp.dot(w2_ref[...], hn, preferred_element_type=jnp.float32)
                 + b2_ref[...])                            # (c, L)

    # --- FullyConvLayer (1x1 conv) -------------------------------------------
    o_ref[...] = (jnp.dot(w3_ref[...], z, preferred_element_type=jnp.float32)
                  + b3_ref[...]).astype(o_ref.dtype)


def _choose_batch_tile(B, n):
    """TB batch samples per grid step: whole problem in one block if small,
    otherwise a lane-dense tile (TB*n multiple of 128, ~>=1024 lanes)."""
    if B * n <= 4096:
        return B
    tb = 128 // math.gcd(n, 128)
    while tb * n < 1024:
        tb *= 2
    return tb


@jax.jit
def output_layer_forward(x, w1, b1, gamma, beta, w2, b2, w3, b3):
    """x: (B, c, t, n) NCHW.  w1: (2c, c, t, 1), b1: (2c,) -- GLU temporal conv.
    gamma/beta: (n, c) -- LayerNorm([n, c]).  w2: (c, c, 1, 1), b2: (c,).
    w3: (out_dim, c, 1, 1), b3: (out_dim,).  Returns (B, out_dim, 1, n)."""
    B, c, T, n = x.shape
    two_c, c_in, t, kw = w1.shape
    assert T == t and c_in == c and two_c == 2 * c and kw == 1
    out_dim = w3.shape[0]
    dtype = x.dtype
    f32 = jnp.float32

    # --- fold identities into the weights (done once, outside the kernel) ---
    w1r = w1[..., 0].astype(f32)                                    # (2c, c, t)
    idp = jnp.zeros((c, c, t), f32).at[:, :, t - 1].set(jnp.eye(c, dtype=f32))
    w1p = (w1r[:c] + idp).reshape(c, c * t)                         # align identity folded
    w1q = w1r[c:].reshape(c, c * t)
    b1p = b1[:c].reshape(c, 1).astype(f32)
    b1q = b1[c:].reshape(c, 1).astype(f32)
    w2f = (w2[:, :, 0, 0] + jnp.eye(c, dtype=f32)).astype(f32)      # residual folded
    b2r = b2.reshape(c, 1).astype(f32)
    w3r = w3[:, :, 0, 0].astype(f32)
    b3r = b3.reshape(out_dim, 1).astype(f32)

    # --- batch tiling: TB samples per grid step, lanes = TB*n ---------------
    TB = _choose_batch_tile(B, n)
    Bpad = -(-B // TB) * TB
    L = TB * n
    grid_steps = Bpad // TB

    # (B, c, t, n) -> (c*t, B*n): each sample occupies n contiguous lanes.
    x2 = jnp.transpose(x, (1, 2, 0, 3)).reshape(c * t, B * n).astype(f32)
    if Bpad != B:
        x2 = jnp.pad(x2, ((0, 0), (0, (Bpad - B) * n)))

    gamma_l = jnp.tile(gamma.T.astype(f32), (1, TB))                # (c, L)
    beta_l = jnp.tile(beta.T.astype(f32), (1, TB))                  # (c, L)
    seg = jnp.repeat(jnp.eye(TB, dtype=f32), n, axis=0)             # (L, TB)
    segt = seg.T                                                    # (TB, L)

    kern = functools.partial(output_layer_kernel,
                             inv_cn=1.0 / float(n * c), eps=float(_LN_EPS))

    weights_bytes = 4 * (w1p.size + w1q.size + b1p.size + b1q.size + gamma_l.size
                         + beta_l.size + seg.size + segt.size + w2f.size + b2r.size
                         + w3r.size + b3r.size)
    cost = pl.CostEstimate(
        flops=int(Bpad * n * (2 * (2 * c) * (c * t) + 2 * c * c + 2 * out_dim * c + 12 * c)),
        transcendentals=int(Bpad * n * (2 * c + 1)),
        bytes_accessed=int(4 * (x2.size + out_dim * Bpad * n) + weights_bytes),
    )

    out2 = pl.pallas_call(
        kern,
        out_shape=jax.ShapeDtypeStruct((out_dim, Bpad * n), f32),
        grid_spec=pltpu.PrefetchScalarGridSpec(
            num_scalar_prefetch=0,
            grid=(grid_steps,),
            in_specs=[
                pl.BlockSpec((c * t, L), lambda g: (0, g)),         # x slab (pipelined)
                pl.BlockSpec((c, c * t), lambda g: (0, 0)),         # w1p (grid-invariant)
                pl.BlockSpec((c, 1), lambda g: (0, 0)),             # b1p
                pl.BlockSpec((c, c * t), lambda g: (0, 0)),         # w1q
                pl.BlockSpec((c, 1), lambda g: (0, 0)),             # b1q
                pl.BlockSpec((c, L), lambda g: (0, 0)),             # gamma
                pl.BlockSpec((c, L), lambda g: (0, 0)),             # beta
                pl.BlockSpec((L, TB), lambda g: (0, 0)),            # seg
                pl.BlockSpec((TB, L), lambda g: (0, 0)),            # seg^T
                pl.BlockSpec((c, c), lambda g: (0, 0)),             # w2 (+I)
                pl.BlockSpec((c, 1), lambda g: (0, 0)),             # b2
                pl.BlockSpec((out_dim, c), lambda g: (0, 0)),       # w3
                pl.BlockSpec((out_dim, 1), lambda g: (0, 0)),       # b3
            ],
            out_specs=pl.BlockSpec((out_dim, L), lambda g: (0, g)),
        ),
        compiler_params=pltpu.CompilerParams(
            dimension_semantics=("parallel",)),                     # batch tiles independent
        cost_estimate=cost,
    )(x2, w1p, b1p, w1q, b1q, gamma_l, beta_l, seg, segt, w2f, b2r, w3r, b3r)

    # (out_dim, Bpad*n) -> (B, out_dim, 1, n)
    out = out2[:, :B * n].reshape(out_dim, B, n)
    return jnp.transpose(out, (1, 0, 2))[:, :, None, :].astype(dtype)


def reference_output_layer(x, w1, b1, gamma, beta, w2, b2, w3, b3, eps=_LN_EPS):
    """Pure-JAX mirror of the PyTorch OutputLayer.forward (input_length == t)."""
    B, c, T, n = x.shape
    t = w1.shape[2]
    assert T == t
    # tconv1: GLU temporal conv (kt=t) + align identity slice
    x_conv = jnp.einsum('oit,bitn->bon', w1[..., 0], x)[:, :, None, :] \
        + b1[None, :, None, None]                                    # (B, 2c, 1, n)
    x_in = x[:, :, t - 1:, :]                                        # (B, c, 1, n)
    x_t1 = (x_conv[:, :c] + x_in) * _sigmoid(x_conv[:, c:])          # (B, c, 1, n)
    # LayerNorm over [n, c]
    y = jnp.transpose(x_t1, (0, 2, 3, 1))                            # (B, 1, n, c)
    mu = jnp.mean(y, axis=(-2, -1), keepdims=True)
    var = jnp.mean(jnp.square(y - mu), axis=(-2, -1), keepdims=True)
    y = (y - mu) / jnp.sqrt(var + eps) * gamma + beta
    x_ln = jnp.transpose(y, (0, 3, 1, 2))                            # (B, c, 1, n)
    # tconv2: sigmoid temporal conv (kt=1) + residual
    x_c2 = jnp.einsum('oi,bitn->botn', w2[:, :, 0, 0], x_ln) + b2[None, :, None, None]
    x_t2 = _sigmoid(x_c2 + x_ln)
    # fc (1x1 conv)
    return jnp.einsum('oi,bitn->botn', w3[:, :, 0, 0], x_t2) + b3[None, :, None, None]


if __name__ == "__main__":
    # OutputLayer(c=4, t=8, n=16, out_dim=1); input x: (B=2, c=4, t=8, n=16)
    B, c, t, n, out_dim = 2, 4, 8, 16, 1
    key = jax.random.PRNGKey(0)
    kx, k1, kb1, kg, kbt, k2, kb2, k3, kb3 = jax.random.split(key, 9)

    x = jax.random.normal(kx, (B, c, t, n), dtype=jnp.float32)

    # Conv2d-style init (kaiming_uniform a=sqrt(5) -> U(±1/sqrt(fan_in)))
    bound1 = 1.0 / math.sqrt(c * t)
    w1 = jax.random.uniform(k1, (2 * c, c, t, 1), minval=-bound1, maxval=bound1,
                            dtype=jnp.float32)
    b1 = jax.random.uniform(kb1, (2 * c,), minval=-bound1, maxval=bound1,
                            dtype=jnp.float32)
    gamma = 1.0 + 0.1 * jax.random.normal(kg, (n, c), dtype=jnp.float32)
    beta = 0.1 * jax.random.normal(kbt, (n, c), dtype=jnp.float32)
    bound2 = 1.0 / math.sqrt(c)
    w2 = jax.random.uniform(k2, (c, c, 1, 1), minval=-bound2, maxval=bound2,
                            dtype=jnp.float32)
    b2 = jax.random.uniform(kb2, (c,), minval=-bound2, maxval=bound2, dtype=jnp.float32)
    w3 = jax.random.uniform(k3, (out_dim, c, 1, 1), minval=-bound2, maxval=bound2,
                            dtype=jnp.float32)
    b3 = jax.random.uniform(kb3, (out_dim,), minval=-bound2, maxval=bound2,
                            dtype=jnp.float32)

    out = output_layer_forward(x, w1, b1, gamma, beta, w2, b2, w3, b3)
    out = jax.block_until_ready(out)

    ref = reference_output_layer(x, w1, b1, gamma, beta, w2, b2, w3, b3)
    assert out.shape == (B, out_dim, 1, n), out.shape
    assert jnp.allclose(out, ref, atol=5e-5, rtol=5e-5), "mismatch vs reference"

    print("KERNEL_OK")
</pallas_src>

<mosaic_0001>
module attributes {stable_mosaic.version = 11 : i64} {
  func.func @output_layer_kernel(%arg0: i32, %arg1: memref<32x32xf32, #tpu.memory_space<vmem>>, %arg2: memref<4x32xf32, #tpu.memory_space<vmem>>, %arg3: memref<4x1xf32, #tpu.memory_space<vmem>>, %arg4: memref<4x32xf32, #tpu.memory_space<vmem>>, %arg5: memref<4x1xf32, #tpu.memory_space<vmem>>, %arg6: memref<4x32xf32, #tpu.memory_space<vmem>>, %arg7: memref<4x32xf32, #tpu.memory_space<vmem>>, %arg8: memref<32x2xf32, #tpu.memory_space<vmem>>, %arg9: memref<2x32xf32, #tpu.memory_space<vmem>>, %arg10: memref<4x4xf32, #tpu.memory_space<vmem>>, %arg11: memref<4x1xf32, #tpu.memory_space<vmem>>, %arg12: memref<1x4xf32, #tpu.memory_space<vmem>>, %arg13: memref<1x1xf32, #tpu.memory_space<vmem>>, %arg14: memref<1x32xf32, #tpu.memory_space<vmem>>) attributes {dimension_semantics = [#tpu.dimension_semantics<parallel>], iteration_bounds = array<i64: 1>, scalar_prefetch = 0 : i64, scratch_operands = 0 : i64, tpu.core_type = #tpu.core_type<tc>, window_params = [{transform_indices = @transform_0, window_bounds = array<i64: 32, 32>}, {pipeline_mode = #tpu.pipeline_mode<synchronous>, transform_indices = @transform_1, window_bounds = array<i64: 4, 32>}, {pipeline_mode = #tpu.pipeline_mode<synchronous>, transform_indices = @transform_2, window_bounds = array<i64: 4, 1>}, {pipeline_mode = #tpu.pipeline_mode<synchronous>, transform_indices = @transform_3, window_bounds = array<i64: 4, 32>}, {pipeline_mode = #tpu.pipeline_mode<synchronous>, transform_indices = @transform_4, window_bounds = array<i64: 4, 1>}, {pipeline_mode = #tpu.pipeline_mode<synchronous>, transform_indices = @transform_5, window_bounds = array<i64: 4, 32>}, {pipeline_mode = #tpu.pipeline_mode<synchronous>, transform_indices = @transform_6, window_bounds = array<i64: 4, 32>}, {pipeline_mode = #tpu.pipeline_mode<synchronous>, transform_indices = @transform_7, window_bounds = array<i64: 32, 2>}, {pipeline_mode = #tpu.pipeline_mode<synchronous>, transform_indices = @transform_8, window_bounds = array<i64: 2, 32>}, {pipeline_mode = #tpu.pipeline_mode<synchronous>, transform_indices = @transform_9, window_bounds = array<i64: 4, 4>}, {pipeline_mode = #tpu.pipeline_mode<synchronous>, transform_indices = @transform_10, window_bounds = array<i64: 4, 1>}, {pipeline_mode = #tpu.pipeline_mode<synchronous>, transform_indices = @transform_11, window_bounds = array<i64: 1, 4>}, {pipeline_mode = #tpu.pipeline_mode<synchronous>, transform_indices = @transform_12, window_bounds = array<i64: 1, 1>}, {transform_indices = @transform_13, window_bounds = array<i64: 1, 32>}]} {
    %c0 = arith.constant 0 : index
    %c0_0 = arith.constant 0 : index
    %0 = vector.load %arg1[%c0, %c0_0] : memref<32x32xf32, #tpu.memory_space<vmem>>, vector<32x32xf32>
    %c0_1 = arith.constant 0 : index
    %c0_2 = arith.constant 0 : index
    %1 = vector.load %arg2[%c0_1, %c0_2] : memref<4x32xf32, #tpu.memory_space<vmem>>, vector<4x32xf32>
    %cst = arith.constant dense<0.000000e+00> : vector<4x32xf32>
    %2 = tpu.matmul %1, %0, %cst {dimension_numbers = #tpu.dot_dimension_numbers<[1], [0], [0], [1], [0, 0, 1, 1], [], []>} : vector<4x32xf32>, vector<32x32xf32>, vector<4x32xf32> -> vector<4x32xf32>
    %c0_3 = arith.constant 0 : index
    %c0_4 = arith.constant 0 : index
    %3 = vector.load %arg3[%c0_3, %c0_4] : memref<4x1xf32, #tpu.memory_space<vmem>>, vector<4x1xf32>
    %4 = vector.broadcast %3 : vector<4x1xf32> to vector<4x32xf32>
    %5 = arith.addf %2, %4 : vector<4x32xf32>
    %c0_5 = arith.constant 0 : index
    %c0_6 = arith.constant 0 : index
    %6 = vector.load %arg4[%c0_5, %c0_6] : memref<4x32xf32, #tpu.memory_space<vmem>>, vector<4x32xf32>
    %cst_7 = arith.constant dense<0.000000e+00> : vector<4x32xf32>
    %7 = tpu.matmul %6, %0, %cst_7 {dimension_numbers = #tpu.dot_dimension_numbers<[1], [0], [0], [1], [0, 0, 1, 1], [], []>} : vector<4x32xf32>, vector<32x32xf32>, vector<4x32xf32> -> vector<4x32xf32>
    %c0_8 = arith.constant 0 : index
    %c0_9 = arith.constant 0 : index
    %8 = vector.load %arg5[%c0_8, %c0_9] : memref<4x1xf32, #tpu.memory_space<vmem>>, vector<4x1xf32>
    %9 = vector.broadcast %8 : vector<4x1xf32> to vector<4x32xf32>
    %10 = arith.addf %7, %9 : vector<4x32xf32>
    %cst_10 = arith.constant 0.000000e+00 : f32
    %11 = vector.broadcast %cst_10 : f32 to vector<4x32xf32>
    %12 = arith.subf %11, %10 : vector<4x32xf32>
    %13 = math.exp %12 : vector<4x32xf32>
    %cst_11 = arith.constant 1.000000e+00 : f32
    %14 = vector.broadcast %cst_11 : f32 to vector<4x32xf32>
    %15 = arith.addf %14, %13 : vector<4x32xf32>
    %cst_12 = arith.constant 1.000000e+00 : f32
    %16 = vector.broadcast %cst_12 : f32 to vector<4x32xf32>
    %17 = arith.divf %16, %15 : vector<4x32xf32>
    %18 = arith.mulf %5, %17 : vector<4x32xf32>
    %cst_13 = arith.constant dense<0.000000e+00> : vector<32xf32>
    %19 = vector.multi_reduction <add>, %18, %cst_13 [0] : vector<4x32xf32> to vector<32xf32>
    %20 = vector.shape_cast %19 : vector<32xf32> to vector<1x32xf32>
    %21 = arith.mulf %18, %18 : vector<4x32xf32>
    %cst_14 = arith.constant dense<0.000000e+00> : vector<32xf32>
    %22 = vector.multi_reduction <add>, %21, %cst_14 [0] : vector<4x32xf32> to vector<32xf32>
    %23 = vector.shape_cast %22 : vector<32xf32> to vector<1x32xf32>
    %c0_15 = arith.constant 0 : index
    %c0_16 = arith.constant 0 : index
    %24 = vector.load %arg8[%c0_15, %c0_16] : memref<32x2xf32, #tpu.memory_space<vmem>>, vector<32x2xf32>
    %cst_17 = arith.constant dense<0.000000e+00> : vector<1x2xf32>
    %25 = tpu.matmul %20, %24, %cst_17 {dimension_numbers = #tpu.dot_dimension_numbers<[1], [0], [0], [1], [0, 0, 1, 1], [], []>} : vector<1x32xf32>, vector<32x2xf32>, vector<1x2xf32> -> vector<1x2xf32>
    %c0_18 = arith.constant 0 : index
    %c0_19 = arith.constant 0 : index
    %26 = vector.load %arg8[%c0_18, %c0_19] : memref<32x2xf32, #tpu.memory_space<vmem>>, vector<32x2xf32>
    %cst_20 = arith.constant dense<0.000000e+00> : vector<1x2xf32>
    %27 = tpu.matmul %23, %26, %cst_20 {dimension_numbers = #tpu.dot_dimension_numbers<[1], [0], [0], [1], [0, 0, 1, 1], [], []>} : vector<1x32xf32>, vector<32x2xf32>, vector<1x2xf32> -> vector<1x2xf32>
    %cst_21 = arith.constant 1.562500e-02 : f32
    %28 = vector.broadcast %cst_21 : f32 to vector<1x2xf32>
    %29 = arith.mulf %25, %28 : vector<1x2xf32>
    %cst_22 = arith.constant 1.562500e-02 : f32
    %30 = vector.broadcast %cst_22 : f32 to vector<1x2xf32>
    %31 = arith.mulf %27, %30 : vector<1x2xf32>
    %32 = arith.mulf %29, %29 : vector<1x2xf32>
    %33 = arith.subf %31, %32 : vector<1x2xf32>
    %c0_23 = arith.constant 0 : index
    %c0_24 = arith.constant 0 : index
    %34 = vector.load %arg9[%c0_23, %c0_24] : memref<2x32xf32, #tpu.memory_space<vmem>>, vector<2x32xf32>
    %cst_25 = arith.constant dense<0.000000e+00> : vector<1x32xf32>
    %35 = tpu.matmul %29, %34, %cst_25 {dimension_numbers = #tpu.dot_dimension_numbers<[1], [0], [0], [1], [0, 0, 1, 1], [], []>} : vector<1x2xf32>, vector<2x32xf32>, vector<1x32xf32> -> vector<1x32xf32>
    %c0_26 = arith.constant 0 : index
    %c0_27 = arith.constant 0 : index
    %36 = vector.load %arg9[%c0_26, %c0_27] : memref<2x32xf32, #tpu.memory_space<vmem>>, vector<2x32xf32>
    %cst_28 = arith.constant dense<0.000000e+00> : vector<1x32xf32>
    %37 = tpu.matmul %33, %36, %cst_28 {dimension_numbers = #tpu.dot_dimension_numbers<[1], [0], [0], [1], [0, 0, 1, 1], [], []>} : vector<1x2xf32>, vector<2x32xf32>, vector<1x32xf32> -> vector<1x32xf32>
    %cst_29 = arith.constant 9.99999974E-6 : f32
    %38 = vector.broadcast %cst_29 : f32 to vector<1x32xf32>
    %39 = arith.addf %37, %38 : vector<1x32xf32>
    %40 = math.rsqrt %39 : vector<1x32xf32>
    %41 = vector.broadcast %35 : vector<1x32xf32> to vector<4x32xf32>
    %42 = arith.subf %18, %41 : vector<4x32xf32>
    %43 = vector.broadcast %40 : vector<1x32xf32> to vector<4x32xf32>
    %44 = arith.mulf %42, %43 : vector<4x32xf32>
    %c0_30 = arith.constant 0 : index
    %c0_31 = arith.constant 0 : index
    %45 = vector.load %arg6[%c0_30, %c0_31] : memref<4x32xf32, #tpu.memory_space<vmem>>, vector<4x32xf32>
    %46 = arith.mulf %44, %45 : vector<4x32xf32>
    %c0_32 = arith.constant 0 : index
    %c0_33 = arith.constant 0 : index
    %47 = vector.load %arg7[%c0_32, %c0_33] : memref<4x32xf32, #tpu.memory_space<vmem>>, vector<4x32xf32>
    %48 = arith.addf %46, %47 : vector<4x32xf32>
    %c0_34 = arith.constant 0 : index
    %c0_35 = arith.constant 0 : index
    %49 = vector.load %arg10[%c0_34, %c0_35] : memref<4x4xf32, #tpu.memory_space<vmem>>, vector<4x4xf32>
    %cst_36 = arith.constant dense<0.000000e+00> : vector<4x32xf32>
    %50 = tpu.matmul %49, %48, %cst_36 {dimension_numbers = #tpu.dot_dimension_numbers<[1], [0], [0], [1], [0, 0, 1, 1], [], []>} : vector<4x4xf32>, vector<4x32xf32>, vector<4x32xf32> -> vector<4x32xf32>
    %c0_37 = arith.constant 0 : index
    %c0_38 = arith.constant 0 : index
    %51 = vector.load %arg11[%c0_37, %c0_38] : memref<4x1xf32, #tpu.memory_space<vmem>>, vector<4x1xf32>
    %52 = vector.broadcast %51 : vector<4x1xf32> to vector<4x32xf32>
    %53 = arith.addf %50, %52 : vector<4x32xf32>
    %cst_39 = arith.constant 0.000000e+00 : f32
    %54 = vector.broadcast %cst_39 : f32 to vector<4x32xf32>
    %55 = arith.subf %54, %53 : vector<4x32xf32>
    %56 = math.exp %55 : vector<4x32xf32>
    %cst_40 = arith.constant 1.000000e+00 : f32
    %57 = vector.broadcast %cst_40 : f32 to vector<4x32xf32>
    %58 = arith.addf %57, %56 : vector<4x32xf32>
    %cst_41 = arith.constant 1.000000e+00 : f32
    %59 = vector.broadcast %cst_41 : f32 to vector<4x32xf32>
    %60 = arith.divf %59, %58 : vector<4x32xf32>
    %c0_42 = arith.constant 0 : index
    %c0_43 = arith.constant 0 : index
    %61 = vector.load %arg12[%c0_42, %c0_43] : memref<1x4xf32, #tpu.memory_space<vmem>>, vector<1x4xf32>
    %cst_44 = arith.constant dense<0.000000e+00> : vector<1x32xf32>
    %62 = tpu.matmul %61, %60, %cst_44 {dimension_numbers = #tpu.dot_dimension_numbers<[1], [0], [0], [1], [0, 0, 1, 1], [], []>} : vector<1x4xf32>, vector<4x32xf32>, vector<1x32xf32> -> vector<1x32xf32>
    %c0_45 = arith.constant 0 : index
    %c0_46 = arith.constant 0 : index
    %63 = vector.load %arg13[%c0_45, %c0_46] : memref<1x1xf32, #tpu.memory_space<vmem>>, vector<1x1xf32>
    %64 = vector.broadcast %63 : vector<1x1xf32> to vector<1x32xf32>
    %65 = arith.addf %62, %64 : vector<1x32xf32>
    %c0_47 = arith.constant 0 : index
    %c0_48 = arith.constant 0 : index
    %66 = vector.load %arg14[%c0_47, %c0_48] : memref<1x32xf32, #tpu.memory_space<vmem>>, vector<1x32xf32>
    tpu.vector_store %arg14[%c0_47, %c0_48], %65 {strides = array<i32>} : memref<1x32xf32, #tpu.memory_space<vmem>>, vector<1x32xf32>,
    return
  }
  func.func @transform_0(%arg0: i32) -> (i32, i32) {
    %c0_i32 = arith.constant 0 : i32
    %c0_i32_0 = arith.constant 0 : i32
    return %c0_i32, %arg0 : i32, i32
  }
  func.func @transform_1(%arg0: i32) -> (i32, i32) {
    %c0_i32 = arith.constant 0 : i32
    %c0_i32_0 = arith.constant 0 : i32
    %c0_i32_1 = arith.constant 0 : i32
    return %c0_i32, %c0_i32_0 : i32, i32
  }
  func.func @transform_2(%arg0: i32) -> (i32, i32) {
    %c0_i32 = arith.constant 0 : i32
    %c0_i32_0 = arith.constant 0 : i32
    %c0_i32_1 = arith.constant 0 : i32
    return %c0_i32, %c0_i32_0 : i32, i32
  }
  func.func @transform_3(%arg0: i32) -> (i32, i32) {
    %c0_i32 = arith.constant 0 : i32
    %c0_i32_0 = arith.constant 0 : i32
    %c0_i32_1 = arith.constant 0 : i32
    return %c0_i32, %c0_i32_0 : i32, i32
  }
  func.func @transform_4(%arg0: i32) -> (i32, i32) {
    %c0_i32 = arith.constant 0 : i32
    %c0_i32_0 = arith.constant 0 : i32
    %c0_i32_1 = arith.constant 0 : i32
    return %c0_i32, %c0_i32_0 : i32, i32
  }
  func.func @transform_5(%arg0: i32) -> (i32, i32) {
    %c0_i32 = arith.constant 0 : i32
    %c0_i32_0 = arith.constant 0 : i32
    %c0_i32_1 = arith.constant 0 : i32
    return %c0_i32, %c0_i32_0 : i32, i32
  }
  func.func @transform_6(%arg0: i32) -> (i32, i32) {
    %c0_i32 = arith.constant 0 : i32
    %c0_i32_0 = arith.constant 0 : i32
    %c0_i32_1 = arith.constant 0 : i32
    return %c0_i32, %c0_i32_0 : i32, i32
  }
  func.func @transform_7(%arg0: i32) -> (i32, i32) {
    %c0_i32 = arith.constant 0 : i32
    %c0_i32_0 = arith.constant 0 : i32
    %c0_i32_1 = arith.constant 0 : i32
    return %c0_i32, %c0_i32_0 : i32, i32
  }
  func.func @transform_8(%arg0: i32) -> (i32, i32) {
    %c0_i32 = arith.constant 0 : i32
    %c0_i32_0 = arith.constant 0 : i32
    %c0_i32_1 = arith.constant 0 : i32
    return %c0_i32, %c0_i32_0 : i32, i32
  }
  func.func @transform_9(%arg0: i32) -> (i32, i32) {
    %c0_i32 = arith.constant 0 : i32
    %c0_i32_0 = arith.constant 0 : i32
    %c0_i32_1 = arith.constant 0 : i32
    return %c0_i32, %c0_i32_0 : i32, i32
  }
  func.func @transform_10(%arg0: i32) -> (i32, i32) {
    %c0_i32 = arith.constant 0 : i32
    %c0_i32_0 = arith.constant 0 : i32
    %c0_i32_1 = arith.constant 0 : i32
    return %c0_i32, %c0_i32_0 : i32, i32
  }
  func.func @transform_11(%arg0: i32) -> (i32, i32) {
    %c0_i32 = arith.constant 0 : i32
    %c0_i32_0 = arith.constant 0 : i32
    %c0_i32_1 = arith.constant 0 : i32
    return %c0_i32, %c0_i32_0 : i32, i32
  }
  func.func @transform_12(%arg0: i32) -> (i32, i32) {
    %c0_i32 = arith.constant 0 : i32
    %c0_i32_0 = arith.constant 0 : i32
    %c0_i32_1 = arith.constant 0 : i32
    return %c0_i32, %c0_i32_0 : i32, i32
  }
  func.func @transform_13(%arg0: i32) -> (i32, i32) {
    %c0_i32 = arith.constant 0 : i32
    %c0_i32_0 = arith.constant 0 : i32
    return %c0_i32, %arg0 : i32, i32
  }
}

</mosaic_0001>

<bundles_post_ra>
// kernel: tile.14
= control target key start
LH: loop header
LB: loop body
LE: loop exit
PB: predicated region body
PF: predicated region fallthrough
CT: control target
= control target key end

     0   :  { %vm21_vm0 = vcmask 130048   ;;  %vm27_vm1 = vcmask 261248   ;;  %s67_s0 = inlined_call_operand.vmem [shape: f32[4,2,16], index: 0, kind: input, shape index: {}]   ;;  %s68_s1 = inlined_call_operand.vmem [shape: f32[4,32], index: 1, kind: output, shape index: {}]  }
   0x1   :  { %v37_v0 = vld [vmem:[%s67_s0 + $0x6] sm:$0x3]  ;;  %v38_v1 = vld [vmem:[%s67_s0 + $0x4] sm:$0x3]  ;;  %v39_v2 = vld [vmem:[%s67_s0 + $0x2] sm:$0x3] }
   0x2   :  { %8 = vst [vmem:[#allocation1 + $0x18] sm:$0x3] %v37_v0  ;;  %13 = vst [vmem:[#allocation1 + $0x10] sm:$0x3] %v38_v1  ;;  %v18_v3 = vld [vmem:[%s67_s0] sm:$0x3] }
   0x3   :  { %17 = vst [vmem:[#allocation1 + $0x8] sm:$0x3] %v39_v2  ;;  %19 = vst [vmem:[#allocation1] sm:$0x3] %v18_v3  ;;  %s41_s0 = smov 16  }
   0xa   :  { %v24_v4 = vld [vmem:[#allocation1 + $0x1] ss:$8 sm:$0xf]   ;;  %v20_v5 = vld [vmem:[#allocation1] ss:$8 sm:$0xf]  }
   0xb   :  { %25 = vrot.lane.b32.xlu0 %v24_v4, %s41_s0  ;;  %22 = vst.msk [vmem:[#allocation0] sm:$0xf] %vm21_vm0, %v20_v5  }
  0x7d   :  { %v26_v6 = vpop.permute.xlu0 %25  }
  0x7e   :  { %28 = vst.msk [vmem:[#allocation0] sm:$0xf] %vm27_vm1, %v26_v6  }
  0x85   :  { %v32_v7 = vld [vmem:[#allocation0] sm:$0xf] }
  0x86   :  { %34 = vst [vmem:[%s68_s1] sm:$0xf] %v32_v7 }

// kernel: output_layer_forward.1
= control target key start
LH: loop header
LB: loop body
LE: loop exit
PB: predicated region body
PF: predicated region fallthrough
CT: control target
= control target key end

     0   :  { %v883_v0 = vmov 0.0|0.0   ;;  %vm884_vm0 = vmmov 0   ;;  %v885_v6 = vmov 0.0   ;;  %v886_v7 = vmov 0   ;;  %s1045_s0 = inlined_call_operand.vmem [shape: f32[32,32], index: 0, kind: input, shape index: {}]   ;;  %s1046_s4 = inlined_call_operand.vmem [shape: f32[4,1], index: 4, kind: input, shape index: {}]   ;;  %s1047_s2 = inlined_call_operand.vmem [shape: f32[4,1], index: 2, kind: input, shape index: {}]   ;;  %s1048_s1 = inlined_call_operand.vmem [shape: f32[4,32], index: 1, kind: input, shape index: {}]   ;;  %s1049_s3 = inlined_call_operand.vmem [shape: f32[4,32], index: 3, kind: input, shape index: {}]   ;;  %s1050_s7 = inlined_call_operand.vmem [shape: f32[32,2], index: 7, kind: input, shape index: {}]   ;;  %s1051_s8 = inlined_call_operand.vmem [shape: f32[2,32], index: 8, kind: input, shape index: {}]   ;;  %s1052_s10 = inlined_call_operand.vmem [shape: f32[4,1], index: 10, kind: input, shape index: {}]   ;;  %s1053_s12 = inlined_call_operand.<no memory space> [shape: f32[1,1], index: 12, kind: input, shape index: {}]   ;;  %s1054_s5 = inlined_call_operand.vmem [shape: f32[4,32], index: 5, kind: input, shape index: {}]   ;;  %s1055_s6 = inlined_call_operand.vmem [shape: f32[4,32], index: 6, kind: input, shape index: {}]   ;;  %s1056_s9 = inlined_call_operand.vmem [shape: f32[4,4], index: 9, kind: input, shape index: {}]   ;;  %s1057_s11 = inlined_call_operand.vmem [shape: f32[1,4], index: 11, kind: input, shape index: {}]   ;;  %s1058_s13 = inlined_call_operand.vmem [shape: f32[1,32], index: 13, kind: output, shape index: {}]  }
   0x1   :  { %843 = vmatprep.subr.bf16.mxu0 %v883_v0  ;;  %849 = vmatprep.subr.bf16.mxu1 %v883_v0  ;;  %v46_v1 = vld [vmem:[%s1045_s0] sm:$0xff]  ;;  %v47_v2 = vld [vmem:[%s1045_s0 + $0x8] sm:$0xff]  ;;  %v48_v3 = vld [vmem:[%s1045_s0 + $0x10] sm:$0xff]  ;;  %vm57_vm1 = vcmask 261120   ;;  %vm218_vm2 = vcmask 257024   ;;  %vm393_vm3 = vcmask 1041408   ;;  %v18_v58 = vstv %s1053_s12 }
   0x2   :  { %v844_v4 = vpack.c.bf16 %v47_v2, %v46_v1  ;;  %v49_v5 = vld [vmem:[%s1045_s0 + $0x18] sm:$0xff]  ;;  %787 = vmatprep.mubr.msk.f32.mxu0 %vm884_vm0, %v885_v6  ;;  %798 = vmatprep.mubr.msk.f32.mxu1 %vm884_vm0, %v885_v6  ;;  %v132_v8 = vld [vmem:[%s1046_s4] sm:$0xf]  ;;  %v235_v14 = vld [vmem:[%s1050_s7 + $0x8] sm:$0xff]  ;;  %vm389_vm4 = vcmask 15360   ;;  %v541_v62 = vlaneseq  ;;  %vm566_vm5 = vcmask 1043456  }
   0x3   :  { %871 = vset.pattern.permute.xlu0 %v886_v7  ;;  %872 = vset.pattern.permute.xlu1 %v886_v7  ;;  %v847_v9 = vpack.c.bf16 %v49_v5, %v48_v3  ;;  %v51_v10 = vld [vmem:[%s1047_s2] sm:$0xf]  ;;  %v236_v15 = vld [vmem:[%s1050_s7 + $0x10] sm:$0xff]  ;;  %v237_v17 = vld [vmem:[%s1050_s7 + $0x18] sm:$0xff]  ;;  %19 = vst [vmem:[#allocation2] sm:$0x1] %v18_v58 }
   0x4   :  { %845 = vmatpush3.bf16.msra.mxu0 %v844_v4  ;;  %851 = vmatpush3.bf16.msra.mxu1 %v844_v4  ;;  %v50_v11 = vld [vmem:[%s1048_s1] sm:$0xf]  ;;  %v859_v18 = vpack.c.bf16 %v237_v17, %v236_v15  ;;  %v542_v2 = vshrl.u32 %v541_v62, 7  ;;  %vm562_vm6 = vcmask 31744   ;;  %vm733_vm7 = vcmask 253952  }
   0x5   :  { %846 = vmatprep.subr.bf16.mxu0 %v883_v0  ;;  %852 = vmatprep.subr.bf16.mxu1 %v883_v0  ;;  %v131_v12 = vld [vmem:[%s1049_s3] sm:$0xf] }
   0x6   :  { %135 = vperm.xlu0 %871, %v132_v8   ;;  %v234_v13 = vld [vmem:[%s1050_s7] sm:$0xff]  ;;  %v543_v3 = vsub.s32 0, %v542_v2 }
   0x7   :  { %v856_v16 = vpack.c.bf16 %v235_v14, %v234_v13  ;;  %v388_v48 = vld [vmem:[%s1051_s8] sm:$0x3] }
   0x8   :  { %848 = vmatpush3.bf16.msra.mxu0 %v847_v9  ;;  %854 = vmatpush3.bf16.msra.mxu1 %v847_v9  ;;  %v556_v57 = vld [vmem:[%s1052_s10] sm:$0xf] }
   0x9   :  { %855 = vmatprep.subr.bf16.mxu0 %v883_v0  ;;  %861 = vmatprep.subr.bf16.mxu1 %v883_v0  ;;  %v551_v8 = vld [vmem:[%s1054_s5] sm:$0xf] }
   0xa   :  { %54 = vperm.xlu0 %871, %v51_v10   ;;  %559 = vperm.xlu1 %872, %v556_v57   ;;  %v647_v59 = vld [vmem:[#allocation2] sm:$0x1] }
   0xb   :  { %788 = vmatmul.mubr.msk.f32.vlgmr.msra.gmra.mrb[0].mxu0 %vm57_vm1, %v50_v11  ;;  %799 = vmatmul.mubr.msk.f32.vlgmr.msra.gmra.mrb[0].mxu1 %vm57_vm1, %v131_v12  ;;  %v553_v10 = vld [vmem:[%s1055_s6] sm:$0xf] }
   0xc   :  { %809 = vmatprep.mubr.msk.f32.mxu0 %vm884_vm0, %v885_v6  ;;  %820 = vmatprep.mubr.msk.f32.mxu1 %vm884_vm0, %v885_v6  ;;  %v555_v13 = vld [vmem:[%s1056_s9] sm:$0xf] }
   0xd   :  { %857 = vmatpush3.bf16.msra.mxu0 %v856_v16  ;;  %863 = vmatpush3.bf16.msra.mxu1 %v856_v16 }
   0xe   :  { %858 = vmatprep.subr.bf16.mxu0 %v883_v0  ;;  %864 = vmatprep.subr.bf16.mxu1 %v883_v0 }
   0xf   :  { %650 = vperm.xlu1 %872, %v647_v59  }
  0x11   :  { %860 = vmatpush3.bf16.msra.mxu0 %v859_v18  ;;  %866 = vmatpush3.bf16.msra.mxu1 %v859_v18 }
  0x12   :  { %823 = vmatprep.subr.mxu0 %v885_v6  ;;  %828 = vmatprep.subr.mxu1 %v885_v6 }
  0x85   :  { %v136_v19 = vpop.permute.xlu0 %135 }
  0x89   :  { %v55_v29 = vpop.permute.xlu0 %54  ;;  %v560_v14 = vpop.permute.xlu1 %559 }
  0xde   :  { %v127_v20 = vpop.f32.mrb[0].mxu0  ;;  %v207_v21 = vpop.f32.mrb[0].mxu1 }
  0xdf   :  { %v208_v22 = vadd.f32 %v207_v21, %v136_v19  ;;  %v800_v23 = vpop.f32.mrb[1].mxu1  ;;  %v789_v24 = vpop.f32.mrb[1].mxu0  ;;  %v128_v30 = vadd.f32 %v127_v20, %v55_v29 }
  0xe0   :  { %v651_v24 = vpop.permute.xlu1 %650 }
  0xe1   :  { %v211_v25 = vsub.f32 0.0, %v208_v22  ;;  %v646_v22 = vld [vmem:[%s1057_s11] sm:$0x1] }
  0xe3   :  { %v212_v26 = vmul.f32 1.442695, %v211_v25  ;;  %v656_v25 = vrot.slane %v651_v24, %v543_v3 }
  0xe5   :  { %873 = vpow2.f32 %v212_v26 }
  0xef   :  { %v874_v27 = vpop.eup %873 }
  0xf0   :  { %v214_v28 = vadd.f32 1.0, %v874_v27 }
  0xf2   :  { %875 = vrcp.f32 %v214_v28 }
  0xfc   :  { %v876_v31 = vpop.eup %875 }
  0xfd   :  { %v217_v32 = vmul.f32 %v876_v31, %v128_v30 }
  0xff   :  { %v219_v33 = vsel %vm218_vm2, %v217_v32, 0.0  ;;  %v226_v34 = vmul.f32 %v217_v32, %v217_v32 }
 0x100   :  { %v220_v35 = vrot.slane %v219_v33, 4 }
 0x101   :  { %v227_v36 = vsel %vm218_vm2, %v226_v34, 0.0 }
 0x102   :  { %v221_v37 = vadd.f32 %v220_v35, %v219_v33  ;;  %v228_v38 = vrot.slane %v227_v36, 4 }
 0x104   :  { %v222_v39 = vrot.slane %v221_v37, 2  ;;  %v229_v40 = vadd.f32 %v228_v38, %v227_v36 }
 0x106   :  { %v223_v41 = vadd.f32 %v222_v39, %v221_v37  ;;  %v230_v42 = vrot.slane %v229_v40, 2 }
 0x108   :  { %v224_v43 = vrot.slane %v223_v41, 1  ;;  %v231_v44 = vadd.f32 %v230_v42, %v229_v40 }
 0x10a   :  { %v225_v45 = vadd.f32 %v224_v43, %v223_v41  ;;  %v232_v46 = vrot.slane %v231_v44, 1 }
 0x10c   :  { %810 = vmatmul.mubr.msk.f32.vlgmr.msra.gmra.mrb[2].mxu0 %vm57_vm1, %v225_v45  ;;  %v233_v47 = vadd.f32 %v232_v46, %v231_v44 }
 0x10d   :  { %825 = vmatprep.mubr.msk.f32.mxu0 %vm884_vm0, %v885_v6  ;;  %824 = vmatpush3.msk.msra.mxu0 %vm393_vm3, %v388_v48 }
 0x10e   :  { %821 = vmatmul.mubr.msk.f32.vlgmr.msra.gmra.mrb[2].mxu1 %vm57_vm1, %v233_v47  ;;  %833 = vmatprep.subr.mxu0 %v885_v6 }
 0x10f   :  { %830 = vmatprep.mubr.msk.f32.mxu1 %vm884_vm0, %v885_v6  ;;  %829 = vmatpush3.msk.msra.mxu1 %vm393_vm3, %v388_v48 }
 0x110   :  { %838 = vmatprep.subr.mxu1 %v885_v6 }
 0x1df   :  { %v307_v49 = vpop.f32.mrb[2].mxu0 }
 0x1e0   :  { %v384_v50 = vmul.f32 0.015625, %v307_v49  ;;  %v811_v51 = vpop.f32.mrb[3].mxu0 }
 0x1e1   :  { %v380_v52 = vpop.f32.mrb[2].mxu1 }
 0x1e2   :  { %v386_v53 = vmul.f32 %v384_v50, %v384_v50  ;;  %v385_v54 = vmul.f32 0.015625, %v380_v52  ;;  %v822_v55 = vpop.f32.mrb[3].mxu1  ;;  %826 = vmatmul.mubr.msk.f32.vlgmr.msra.gmra.mrb[4].mxu0 %vm389_vm4, %v384_v50 }
 0x1e3   :  { %835 = vmatprep.mubr.msk.f32.mxu0 %vm884_vm0, %v885_v6 }
 0x1e4   :  { %v387_v56 = vsub.f32 %v385_v54, %v386_v53 }
 0x1e6   :  { %831 = vmatmul.mubr.msk.f32.vlgmr.msra.gmra.mrb[4].mxu1 %vm389_vm4, %v387_v56 }
 0x1e7   :  { %840 = vmatprep.mubr.msk.f32.mxu1 %vm884_vm0, %v885_v6 }
 0x2b5   :  { %v463_v60 = vpop.f32.mrb[4].mxu0 }
 0x2b6   :  { %v827_v61 = vpop.f32.mrb[5].mxu0  ;;  %v544_v4 = vrot.slane %v463_v60, %v543_v3 }
 0x2b8   :  { %v545_v6 = vsub.f32 %v217_v32, %v544_v4 }
 0x2b9   :  { %v536_v63 = vpop.f32.mrb[4].mxu1 }
 0x2ba   :  { %v537_v0 = vadd.f32 1e-05, %v536_v63  ;;  %v832_v1 = vpop.f32.mrb[5].mxu1 }
 0x2bc   :  { %877 = vrsqrt.f32 %v537_v0 }
 0x2c6   :  { %v878_v5 = vpop.eup %877 }
 0x2c7   :  { %v549_v7 = vrot.slane %v878_v5, %v543_v3 }
 0x2c9   :  { %v550_v9 = vmul.f32 %v549_v7, %v545_v6 }
 0x2cb   :  { %v552_v11 = vmul.f32 %v551_v8, %v550_v9 }
 0x2cd   :  { %v554_v12 = vadd.f32 %v553_v10, %v552_v11 }
 0x2cf   :  { %834 = vmatpush3.msk.msra.mxu0 %vm566_vm5, %v554_v12 }
 0x2d0   :  { %836 = vmatmul.mubr.msk.f32.vlgmr.msra.gmra.mrb[6].mxu0 %vm562_vm6, %v555_v13 }
 0x3a3   :  { %v636_v15 = vpop.f32.mrb[6].mxu0 }
 0x3a4   :  { %v637_v16 = vadd.f32 %v636_v15, %v560_v14  ;;  %v837_v17 = vpop.f32.mrb[7].mxu0 }
 0x3a6   :  { %v640_v18 = vsub.f32 0.0, %v637_v16 }
 0x3a8   :  { %v641_v19 = vmul.f32 1.442695, %v640_v18 }
 0x3aa   :  { %879 = vpow2.f32 %v641_v19 }
 0x3b4   :  { %v880_v20 = vpop.eup %879 }
 0x3b5   :  { %v643_v21 = vadd.f32 1.0, %v880_v20 }
 0x3b7   :  { %881 = vrcp.f32 %v643_v21 }
 0x3c1   :  { %v882_v23 = vpop.eup %881 }
 0x3c2   :  { %839 = vmatpush3.msk.msra.mxu1 %vm566_vm5, %v882_v23 }
 0x3c3   :  { %841 = vmatmul.mubr.msk.f32.vlgmr.msra.gmra.mrb[6].mxu1 %vm562_vm6, %v646_v22 }
 0x496   :  { %v729_v26 = vpop.f32.mrb[6].mxu1 }
 0x497   :  { %v730_v27 = vadd.f32 %v729_v26, %v656_v25  ;;  %v842_v28 = vpop.f32.mrb[7].mxu1 }
 0x499   :  { %734 = vst.msk [vmem:[%s1058_s13] sm:$0x1] %vm733_vm7, %v730_v27 }

</bundles_post_ra>
